<compile_context>
chip_gen: v7x
topology: tpu7x:2x2x1
jax: 0.10.0
libtpu: 0.0.40
codegen_flags: <defaults>
</compile_context>

<pallas_src>
import jax
import jax.numpy as jnp
import numpy as np
from jax.experimental import pallas as pl
from jax.experimental.pallas import tpu as pltpu


# --------------------------------------------------------------------------
# Kernel 1: (normalize + vgg-stub) feature projection as a pure K-tiled matmul
# --------------------------------------------------------------------------
def _feat_proj_kernel(x_ref, w_ref, b_ref, o_ref, acc_ref):
    k = pl.program_id(1)

    @pl.when(k == 0)
    def _():
        acc_ref[...] = jnp.zeros_like(acc_ref)

    acc_ref[...] += jnp.dot(x_ref[...], w_ref[...],
                            preferred_element_type=jnp.float32)

    @pl.when(k == pl.num_programs(1) - 1)
    def _():
        o_ref[...] = (acc_ref[...] + b_ref[...]).astype(o_ref.dtype)


def _feature_projection(x, w_eff, b_eff, *, tn=256, tk=256):
    """x: (M, D_in) bf16, w_eff: (D_in, F) bf16, b_eff: (1, F) f32 -> (M, F) bf16."""
    M, D_in = x.shape
    F = w_eff.shape[1]
    assert D_in % tk == 0 and F % tn == 0
    grid = (F // tn, D_in // tk)  # (output cols = parallel, contraction = arbitrary/last)
    return pl.pallas_call(
        _feat_proj_kernel,
        out_shape=jax.ShapeDtypeStruct((M, F), jnp.bfloat16),
        grid_spec=pltpu.PrefetchScalarGridSpec(
            num_scalar_prefetch=0,
            grid=grid,
            in_specs=[
                pl.BlockSpec((M, tk), lambda j, k: (0, k)),
                pl.BlockSpec((tk, tn), lambda j, k: (k, j)),
                pl.BlockSpec((1, tn), lambda j, k: (0, j)),
            ],
            out_specs=pl.BlockSpec((M, tn), lambda j, k: (0, j)),
            scratch_shapes=[pltpu.VMEM((M, tn), jnp.float32)],
        ),
        compiler_params=pltpu.CompilerParams(
            dimension_semantics=("parallel", "arbitrary"),
            vmem_limit_bytes=32 * 1024 * 1024,  # actual residency is far below; safe on v5e/v6e/v7x
        ),
    )(x, w_eff, b_eff)


# --------------------------------------------------------------------------
# Kernel 2: fused 3-layer classifier head (small; fully VMEM-resident)
# --------------------------------------------------------------------------
def _head_kernel(f1_ref, f2_ref, w1a_ref, w1b_ref, b1_ref,
                 w2_ref, b2_ref, w3_ref, b3_ref, out_ref):
    # torch.cat((f1, f2), dim=1) @ W1  ==  f1 @ W1[:F] + f2 @ W1[F:]
    h1 = (jnp.dot(f1_ref[...], w1a_ref[...], preferred_element_type=jnp.float32)
          + jnp.dot(f2_ref[...], w1b_ref[...], preferred_element_type=jnp.float32)
          + b1_ref[...])
    h1 = jnp.maximum(h1, 0.2 * h1)          # LeakyReLU(0.2); Dropout = identity (eval)

    h2 = jnp.dot(h1.astype(w2_ref.dtype), w2_ref[...],
                 preferred_element_type=jnp.float32) + b2_ref[...]
    h2 = jnp.maximum(h2, 0.2 * h2)          # LeakyReLU(0.2); Dropout = identity (eval)

    # Final layer: w3 is lane-padded to 128 cols -> MXU-width matmul and a
    # lane-dense (N, 128) store; column 0 is the real logit.
    h3 = jnp.dot(h2.astype(w3_ref.dtype), w3_ref[...],
                 preferred_element_type=jnp.float32) + b3_ref[...]
    out_ref[...] = pl.reciprocal(1.0 + jnp.exp(-h3))   # exact sigmoid (approx could overshoot 1)


# --------------------------------------------------------------------------
# Wrapper
# --------------------------------------------------------------------------
def discriminator_forward(img, ref, params):
    """img, ref: (N, C, H, W) float32. Returns prob (N, 1) float32."""
    N, C, H, W = img.shape
    D_in = C * H * W
    F = params["w_vgg"].shape[1]

    # --- one-time host-side folds (plain XLA ops, outside the kernels) -----
    # Per-channel vgg mean/std broadcast to the flat NCHW layout.
    mean_flat = jnp.repeat(params["vgg_mean"], H * W)     # (D_in,)
    std_flat = jnp.repeat(params["vgg_std"], H * W)       # (D_in,)
    inv_std = 1.0 / std_flat
    # ((x - mean)/std) @ W  ==  x @ (W * (1/std)[:,None])  -  (mean/std) @ W
    w_eff = (params["w_vgg"] * inv_std[:, None]).astype(jnp.bfloat16)
    b_eff = -jnp.dot((mean_flat * inv_std)[None, :], params["w_vgg"])   # (1, F) f32

    # Stack img/ref rows -> a single LHS so the stub weight streams once.
    # TODO(synk): real VGG16 conv backbone is an external injected module
    # (vgg=None); stubbed by a deterministic linear feature projection.
    x = jnp.concatenate([img.reshape(N, D_in), ref.reshape(N, D_in)],
                        axis=0).astype(jnp.bfloat16)       # (2N, D_in)

    feats = _feature_projection(x, w_eff, b_eff)           # (2N, F) bf16
    f1 = feats[:N]
    f2 = feats[N:]

    # Classifier weights: bf16, W1 pre-split for the concat trick, W3/b3 padded
    # to 128 lanes for an MXU-width final matmul and lane-dense store.
    w1a = params["w1"][:F].astype(jnp.bfloat16)
    w1b = params["w1"][F:].astype(jnp.bfloat16)
    w2 = params["w2"].astype(jnp.bfloat16)
    w3 = jnp.pad(params["w3"], ((0, 0), (0, 127))).astype(jnp.bfloat16)
    b3 = jnp.pad(params["b3"], ((0, 0), (0, 127)))

    vmem = pl.BlockSpec(memory_space=pltpu.MemorySpace.VMEM)
    out = pl.pallas_call(
        _head_kernel,
        out_shape=jax.ShapeDtypeStruct((N, 128), jnp.float32),
        in_specs=[vmem] * 9,
        out_specs=vmem,
        compiler_params=pltpu.CompilerParams(vmem_limit_bytes=32 * 1024 * 1024),
    )(f1, f2, w1a, w1b, params["b1"], w2, params["b2"], w3, b3)

    return out[:, :1]                                       # (N, 1) probability


# --------------------------------------------------------------------------
# Params / test harness
# --------------------------------------------------------------------------
def _xavier_normal(key, shape, gain=0.02):
    fan_in, fan_out = shape
    std = gain * np.sqrt(2.0 / (fan_in + fan_out))
    return jax.random.normal(key, shape, dtype=jnp.float32) * std


def make_params(key, d_in, feat_dim, n_hidden):
    k_vgg, k1, k2, k3 = jax.random.split(key, 4)
    return {
        "vgg_mean": jnp.array([0.485, 0.456, 0.406], dtype=jnp.float32),
        "vgg_std": jnp.array([0.229, 0.224, 0.225], dtype=jnp.float32),
        # stub "vgg16" feature projection (deterministic, fixed)
        "w_vgg": _xavier_normal(k_vgg, (d_in, feat_dim), gain=1.0),
        # classifier: Linear(2F, H) -> LeakyReLU -> Linear(H, H) -> LeakyReLU -> Linear(H, 1) -> Sigmoid
        "w1": _xavier_normal(k1, (2 * feat_dim, n_hidden)),
        "b1": jnp.zeros((1, n_hidden), dtype=jnp.float32),
        "w2": _xavier_normal(k2, (n_hidden, n_hidden)),
        "b2": jnp.zeros((1, n_hidden), dtype=jnp.float32),
        "w3": _xavier_normal(k3, (n_hidden, 1)),
        "b3": jnp.zeros((1, 1), dtype=jnp.float32),
    }


if __name__ == "__main__":
    # Small shapes consistent with the forward: NCHW RGB images, batch=2.
    N, C, H, W = 2, 3, 16, 16
    FEAT = 512        # stands in for 512*7*7 vgg feature size
    N_HIDDEN = 256    # stands in for n_hidden=1024

    key = jax.random.PRNGKey(0)
    k_img, k_ref, k_par = jax.random.split(key, 3)
    img = jax.random.uniform(k_img, (N, C, H, W), dtype=jnp.float32)
    ref = jax.random.uniform(k_ref, (N, C, H, W), dtype=jnp.float32)

    params = make_params(k_par, C * H * W, FEAT, N_HIDDEN)

    prob = discriminator_forward(img, ref, params)
    prob = jax.block_until_ready(prob)

    assert prob.shape == (N, 1)
    assert bool(jnp.all((prob >= 0.0) & (prob <= 1.0)))
    print("KERNEL_OK")
</pallas_src>

<mosaic_0001>
module attributes {stable_mosaic.version = 11 : i64} {
  func.func @_feat_proj_kernel(%arg0: i32, %arg1: i32, %arg2: memref<4x256xbf16, #tpu.memory_space<vmem>>, %arg3: memref<256x256xbf16, #tpu.memory_space<vmem>>, %arg4: memref<1x256xf32, #tpu.memory_space<vmem>>, %arg5: memref<4x256xbf16, #tpu.memory_space<vmem>>, %arg6: memref<4x256xf32, #tpu.memory_space<vmem>>) attributes {dimension_semantics = [#tpu.dimension_semantics<parallel>, #tpu.dimension_semantics<arbitrary>], iteration_bounds = array<i64: 2, 3>, scalar_prefetch = 0 : i64, scratch_operands = 1 : i64, tpu.core_type = #tpu.core_type<tc>, window_params = [{transform_indices = @transform_0, window_bounds = array<i64: 4, 256>}, {transform_indices = @transform_1, window_bounds = array<i64: 256, 256>}, {transform_indices = @transform_2, window_bounds = array<i64: 1, 256>}, {transform_indices = @transform_3, window_bounds = array<i64: 4, 256>}]} {
    %c0_i32 = arith.constant 0 : i32
    %0 = arith.cmpi eq, %arg1, %c0_i32 : i32
    %1 = arith.extui %0 : i1 to i32
    %c0_i32_0 = arith.constant 0 : i32
    %2 = arith.cmpi ne, %1, %c0_i32_0 : i32
    scf.if %2 {
      %cst_9 = arith.constant 0.000000e+00 : f32
      %12 = vector.broadcast %cst_9 : f32 to vector<4x256xf32>
      %c0_10 = arith.constant 0 : index
      %c0_11 = arith.constant 0 : index
      %13 = vector.load %arg6[%c0_10, %c0_11] : memref<4x256xf32, #tpu.memory_space<vmem>>, vector<4x256xf32>
      tpu.vector_store %arg6[%c0_10, %c0_11], %12 {strides = array<i32>} : memref<4x256xf32, #tpu.memory_space<vmem>>, vector<4x256xf32>,
    } else {
    }
    %c0 = arith.constant 0 : index
    %c0_1 = arith.constant 0 : index
    %3 = vector.load %arg6[%c0, %c0_1] : memref<4x256xf32, #tpu.memory_space<vmem>>, vector<4x256xf32>
    %c0_2 = arith.constant 0 : index
    %c0_3 = arith.constant 0 : index
    %4 = vector.load %arg2[%c0_2, %c0_3] : memref<4x256xbf16, #tpu.memory_space<vmem>>, vector<4x256xbf16>
    %c0_4 = arith.constant 0 : index
    %c0_5 = arith.constant 0 : index
    %5 = vector.load %arg3[%c0_4, %c0_5] : memref<256x256xbf16, #tpu.memory_space<vmem>>, vector<256x256xbf16>
    %cst = arith.constant dense<0.000000e+00> : vector<4x256xf32>
    %6 = tpu.matmul %4, %5, %cst {dimension_numbers = #tpu.dot_dimension_numbers<[1], [0], [0], [1], [0, 0, 1, 1], [], []>} : vector<4x256xbf16>, vector<256x256xbf16>, vector<4x256xf32> -> vector<4x256xf32>
    %7 = arith.addf %3, %6 : vector<4x256xf32>
    %c0_6 = arith.constant 0 : index
    %c0_7 = arith.constant 0 : index
    %8 = vector.load %arg6[%c0_6, %c0_7] : memref<4x256xf32, #tpu.memory_space<vmem>>, vector<4x256xf32>
    tpu.vector_store %arg6[%c0_6, %c0_7], %7 {strides = array<i32>} : memref<4x256xf32, #tpu.memory_space<vmem>>, vector<4x256xf32>,
    %c2_i32 = arith.constant 2 : i32
    %9 = arith.cmpi eq, %arg1, %c2_i32 : i32
    %10 = arith.extui %9 : i1 to i32
    %c0_i32_8 = arith.constant 0 : i32
    %11 = arith.cmpi ne, %10, %c0_i32_8 : i32
    scf.if %11 {
      %c0_9 = arith.constant 0 : index
      %c0_10 = arith.constant 0 : index
      %12 = vector.load %arg6[%c0_9, %c0_10] : memref<4x256xf32, #tpu.memory_space<vmem>>, vector<4x256xf32>
      %c0_11 = arith.constant 0 : index
      %c0_12 = arith.constant 0 : index
      %13 = vector.load %arg4[%c0_11, %c0_12] : memref<1x256xf32, #tpu.memory_space<vmem>>, vector<1x256xf32>
      %14 = vector.broadcast %13 : vector<1x256xf32> to vector<4x256xf32>
      %15 = arith.addf %12, %14 : vector<4x256xf32>
      %16 = arith.truncf %15 : vector<4x256xf32> to vector<4x256xbf16>
      %c0_13 = arith.constant 0 : index
      %c0_14 = arith.constant 0 : index
      %17 = vector.load %arg5[%c0_13, %c0_14] : memref<4x256xbf16, #tpu.memory_space<vmem>>, vector<4x256xbf16>
      tpu.vector_store %arg5[%c0_13, %c0_14], %16 {strides = array<i32>} : memref<4x256xbf16, #tpu.memory_space<vmem>>, vector<4x256xbf16>,
    } else {
    }
    return
  }
  func.func @transform_0(%arg0: i32, %arg1: i32) -> (i32, i32) {
    %c0_i32 = arith.constant 0 : i32
    %c0_i32_0 = arith.constant 0 : i32
    return %c0_i32, %arg1 : i32, i32
  }
  func.func @transform_1(%arg0: i32, %arg1: i32) -> (i32, i32) {
    %c0_i32 = arith.constant 0 : i32
    return %arg1, %arg0 : i32, i32
  }
  func.func @transform_2(%arg0: i32, %arg1: i32) -> (i32, i32) {
    %c0_i32 = arith.constant 0 : i32
    %c0_i32_0 = arith.constant 0 : i32
    return %c0_i32, %arg0 : i32, i32
  }
  func.func @transform_3(%arg0: i32, %arg1: i32) -> (i32, i32) {
    %c0_i32 = arith.constant 0 : i32
    %c0_i32_0 = arith.constant 0 : i32
    return %c0_i32, %arg0 : i32, i32
  }
}

</mosaic_0001>

<bundles_post_ra>
// kernel: tpu_custom_call.1
= control target key start
LH: loop header
LB: loop body
LE: loop exit
PB: predicated region body
PF: predicated region fallthrough
CT: control target
= control target key end

     0   :  { %s1568_s0 = inlined_call_operand.hbm [shape: bf16[4,768], index: 0, kind: input, shape index: {}]   ;;  %s1569_s1 = inlined_call_operand.hbm [shape: bf16[768,512], index: 1, kind: input, shape index: {}]   ;;  %s1570_s2 = inlined_call_operand.vmem [shape: f32[1,512], index: 2, kind: input, shape index: {}]   ;;  %s1571_s3 = inlined_call_operand.hbm [shape: bf16[4,512], index: 3, kind: output, shape index: {}]  }
   0x1   :  { %1580 = sst [smem:[#allocation20_spill]] %s1568_s0 }
   0x2   :  { %8 = vsyncpa [#allocation4], 0 }
   0x3   :  { %10 = vsyncpa [#allocation4 + $0x1], 0 }
   0x4   :  { %11 = vsyncpa [#allocation7], 0 }
   0x5   :  { %13 = vsyncpa [#allocation7 + $0x1], 0 }
   0x6   :  { %14 = vsyncpa [#allocation5], 0 }
   0x7   :  { %16 = vsyncpa [#allocation5 + $0x1], 0  ;;  %s1174_s12 = smov 0   ;;  %s1176_s13 = smov 0  }
   0x8   :  { %s1178_s14 = smov 0   ;;  %s1180_s15 = smov 0  }
   0x9   :  { %s1182_s16 = smov 0   ;;  %s1184_s17 = smov 0  }
   0xa   :  { %s1186_s18 = smov 0   ;;  %s1188_s19 = smov 0  }
   0xb   :  { %s1190_s20 = smov 0   ;;  %s1192_s21 = smov 0  }
   0xc   :  { %s1194_s22 = smov 0   ;;  %s1196_s23 = smov 0  }
   0xd   :  { %s1198_s24 = smov 0   ;;  %s1200_s25 = smov 0  }
   0xe LB: > { %1581 = sst [smem:[#allocation12_spill]] %s1101_s14  ;;  %s690_s26 = sadd.s32 4294967295, %s1145_s25   ;;  %s1145_s25 = sphi %s1200_s25, %s22_s25   ;;  %s1141_s24 = sphi %s1198_s24, %s1615_s24   ;;  %s1137_s23 = sphi %s1196_s23, %s1625_s23   ;;  %s1133_s22 = sphi %s1194_s22, %s1613_s22   ;;  %s1129_s21 = sphi %s1192_s21, %s1624_s21   ;;  %s1125_s20 = sphi %s1190_s20, %s1612_s20   ;;  %s1121_s19 = sphi %s1188_s19, %s1623_s19   ;;  %s1117_s18 = sphi %s1186_s18, %s1622_s18   ;;  %s1113_s17 = sphi %s1184_s17, %s1621_s17   ;;  %s1109_s16 = sphi %s1182_s16, %s1620_s16   ;;  %s1105_s15 = sphi %s1180_s15, %s1619_s15   ;;  %s1101_s14 = sphi %s1178_s14, %s1609_s14   ;;  %s1097_s13 = sphi %s1176_s13, %s1618_s13   ;;  %s1093_s12 = sphi %s1174_s12, %s1617_s12  }
   0xf   : > { %1582 = sst [smem:[#allocation13_spill]] %s1125_s20  ;;  %s31_s28 = sadd.s32 1, %s1137_s23 }
  0x10   : > { %1583 = sst [smem:[#allocation14_spill]] %s1141_s24  ;;  %s34_s29 = sadd.s32 1, %s1141_s24 }
  0x11   : > { %p32_p0 = scmp.ge.s32.totalorder %s31_s28, 3  ;;  %s41_s30 = sadd.s32 1, %s1125_s20 }
  0x12   : > { %p48_p1 = scmp.ne.s32.totalorder %s1125_s20, %s1121_s19  ;;  %p49_p2 = scmp.eq.s32.totalorder %s1145_s25, 0 }
  0x13   : > { %s1627_s28 = smov (%p32_p0, %s31_s28), 0  ;;  %s1629_s29 = smov (!%p32_p0, %s34_s29), %s1141_s24 }
  0x14   : > { %1584 = sst [smem:[#allocation15_spill]] %s1627_s28  ;;  %s38_s4 = ssub.s32 %s1137_s23, %s1627_s28 }
  0x15   : > { %p1257_p3 = por %p49_p2, %p48_p1  ;;  %p36_p4 = scmp.ge.s32.totalorder %s1629_s29, 2 }
  0x16   : > { %p39_p5 = scmp.eq.s32.totalorder %s38_s4, 0  ;;  %p54_p6 = scmp.ne.s32.totalorder %s1121_s19, %s1117_s18 }
  0x17   : > { %p1264_p7 = scmp.eq.s32.totalorder %s690_s26, 0  ;;  %s1631_s29 = smov (%p36_p4, %s1629_s29), 0 }
  0x18   : > { %1587 = sst [smem:[#allocation16_spill]] %s1631_s29  ;;  %s65_s9 = ssub.s32 %s1141_s24, %s1631_s29 }
  0x19   : > { %s1271_s7 = scalar_select %p39_p5, %s1125_s20, %s41_s30  }
  0x1a   : > { %p1275_p8 = por %p1264_p7, %p54_p6  ;;  %s66_s10 = sor.u32 %s65_s9, %s38_s4 }
  0x1b   : > { %1588 = sst [smem:[#allocation17_spill]] %s1271_s7  ;;  %s69_s11 = sadd.s32 1, %s1113_s17 }
  0x1c   : > { %s1589_s8 = scalar_select %p1275_p8, 1, 0 }
  0x1d   : > { %p67_p9 = scmp.eq.s32.totalorder %s66_s10, 0  ;;  %p76_p10 = scmp.ne.s32.totalorder %s1113_s17, %s1109_s16 }
  0x1e   : > { %p82_p11 = scmp.ne.s32.totalorder %s1109_s16, %s1105_s15  ;;  %p119_p12 = scmp.eq.s32.totalorder %s65_s9, 0 }
  0x1f   : > { %s1287_s18 = scalar_select %p67_p9, %s1113_s17, %s69_s11  }
  0x20   : > { %p1291_p13 = por %p76_p10, %p49_p2  ;;  %p1297_p0 = por %p82_p11, %p1264_p7 }
  0x21   : > { %1590 = sst [smem:[#allocation18_spill]] %s1287_s18  ;;  %s121_s4 = sadd.s32 1, %s1101_s14 }
  0x22   : > { %s1592_s27 = scalar_select %p1297_p0, 1, 0 }
  0x23   : > { %p131_p1 = scmp.ne.s32.totalorder %s1101_s14, %s1097_s13  ;;  %p132_p4 = scmp.eq.s32.totalorder %s690_s26, 5 }
  0x24   : > { %s1305_s10 = scalar_select %p119_p12, %s1101_s14, %s121_s4  }
  0x25   : > { %p137_p5 = scmp.ne.s32.totalorder %s1097_s13, %s1093_s12  ;;  %s1594_s15 = sadd.s32 4294967294, %s1145_s25  }
  0x26   : > { %1593 = sst [smem:[#allocation19_spill]] %s1305_s10  ;;  %p138_p2 = scmp.eq.s32.totalorder %s1594_s15, 5 }
  0x27   : > { %p1313_p6 = por %p132_p4, %p131_p1  ;;  %p769_p7 = scmp.lt.s32.totalorder %s1145_s25, 6 }
  0x28   : > { %p1318_p9 = por %p138_p2, %p137_p5  ;;  %s158_s11 = sand.u32 1, %s1125_s20  }
  0x29   : > { %s1595_s9 = scalar_select %p1313_p6, 1, 0 }
  0x2a   : > { %s1596_s6 = scalar_select %p1318_p9, 1, 0 }
  0x2b   : > { %s694_s29 = sshll.u32 %s158_s11, 2  ;;  %s749_s4 = sshll.u32 %s1137_s23, 6 }
  0x2c   : > { %s1597_s0 = sld [smem:[#allocation20_spill]]  ;;  %s162_s15 = scalar_lea.vmem [#allocation3], %s694_s29 }
  0x2d   : > { %s170_s18 = sshll.u32 %s162_s15, 4  ;;  %p1333_p10 = pnand %p769_p7, %p1257_p3  ;;  %s1329_s18 = int_to_ptr.vmem [resolvable:$true] %s170_s18 }
  0x2e   : > { %p1340_p11 = pnand %p769_p7, %p1291_p13  ;;  %s159_s7 = scalar_lea.sflag [#allocation4], %s158_s11 }
  0x2f   : > { %p937_p4 = pneg %p1333_p10 }
  0x32   : > { %s1327_s26 = scalar_lea.hbm %s1597_s0, %s749_s4  ;;  %s940_s15 = scalar_lea.hbm %s1597_s0, 192 }
  0x33   : > { %s935_s29 = scalar_lea.hbm %s1327_s26, 64  ;;  %p941_p13 = scmp.lt.u32.totalorder %s1327_s26, %s1597_s0 }
  0x34   : > { %p936_p1 = scmp.ne.s32.totalorder %s1327_s26, %s935_s29  ;;  %p942_p2 = scmp.lt.u32.totalorder %s940_s15, %s935_s29 }
  0x35   : > { %p944_p12 = scmp.lt.u32.totalorder %s935_s29, %s1327_s26 }
  0x36   : > { %p938_p3 = pnand %p937_p4, %p936_p1  ;;  %p943_p7 = por %p942_p2, %p941_p13 }
  0x38   : > { %p939_p5 = pneg %p938_p3  ;;  %p945_p9 = por %p944_p12, %p943_p7 }
  0x3a   : > { %p946_p6 = pnand %p945_p9, %p939_p5 }
  0x3c   : > { %949 = shalt.err (!%p946_p6)
}
  0x3d   : > { %s950_s11 = scalar_lea.vmem %s1329_s18, 64  ;;  %s1147_s5 = smov [#allocation3]  }
  0x3e   : > { %p951_p1 = scmp.ne.s32.totalorder %s1329_s18, %s950_s11  ;;  %s955_s4 = sshll.u32 %s1147_s5, 4  ;;  %s956_s4 = int_to_ptr.vmem [resolvable:$false] %s955_s4 }
  0x3f   : > { %s957_s20 = scalar_lea.vmem %s956_s4, 128  ;;  %p958_p8 = scmp.lt.s32.totalorder %s1329_s18, %s956_s4 }
  0x40   : > { %p953_p3 = pnand %p951_p1, %p937_p4  ;;  %p959_p13 = scmp.lt.s32.totalorder %s957_s20, %s950_s11 }
  0x42   : > { %p954_p0 = pneg %p953_p3  ;;  %p960_p2 = por %p959_p13, %p958_p8 }
  0x44   : > { %p961_p12 = pnand %p960_p2, %p954_p0 }
  0x46   : > { %964 = shalt.err (!%p961_p12)
}
  0x47   : > { %761 = dma.hbm_to_vmem [thread:$0]  (!%p1333_p10), %s1327_s26, 64, %s1329_s18, %s159_s7  }
  0x48   : > { %p207_p6 = scmp.lt.s32.totalorder %s1145_s25, 7  ;;  %s177_s29 = sand.u32 1, %s1113_s17  }
  0x49   : > { %s699_s15 = sshll.u32 %s1141_s24, 1  ;;  %p1600_p9 = scmp.ge.s32.totalorder %s1145_s25, 1 }
  0x4a   : > { %s697_s11 = sshll.u32 %s177_s29, 8  ;;  %s1602_s10 = sshll.u32 %s1137_s23, 7 }
  0x4b   : > { %p1375_p4 = pnand %p1600_p9, %p207_p6  ;;  %s188_s5 = sadd.s32 %s1602_s10, %s699_s15 }
  0x4c   : > { %s701_s4 = sshll.u32 %s188_s5, 6  ;;  %s181_s18 = scalar_lea.vmem [#allocation6], %s697_s11 }
  0x4d   : > { %s1384_s14 = scalar_lea.hbm %s1569_s1, %s701_s4  ;;  %s191_s26 = sshll.u32 %s181_s18, 4  ;;  %s1386_s26 = int_to_ptr.vmem [resolvable:$true] %s191_s26 }
  0x4e   : > { %s1388_s7 = scalar_lea.sflag [#allocation7], %s177_s29  ;;  %s965_s24 = scalar_lea.hbm %s1384_s14, 4096 }
  0x4f   : > { %p966_p8 = scmp.ne.s32.totalorder %s1384_s14, %s965_s24  ;;  %p967_p0 = pneg %p1340_p11 }
  0x50   : > { %s970_s10 = scalar_lea.hbm %s1569_s1, 24576  ;;  %p971_p7 = scmp.lt.u32.totalorder %s1384_s14, %s1569_s1 }
  0x51   : > { %p968_p10 = pnand %p967_p0, %p966_p8  ;;  %p972_p1 = scmp.lt.u32.totalorder %s970_s10, %s965_s24 }
  0x52   : > { %p974_p13 = scmp.lt.u32.totalorder %s965_s24, %s1384_s14 }
  0x53   : > { %p969_p5 = pneg %p968_p10  ;;  %p973_p3 = por %p972_p1, %p971_p7 }
  0x55   : > { %p975_p2 = por %p974_p13, %p973_p3 }
  0x57   : > { %p976_p12 = pnand %p975_p2, %p969_p5 }
  0x59   : > { %979 = shalt.err (!%p976_p12)
}
  0x5a   : > { %s980_s29 = scalar_lea.vmem %s1386_s26, 4096  ;;  %s1148_s11 = smov [#allocation6]  }
  0x5b   : > { %p981_p6 = scmp.ne.s32.totalorder %s1386_s26, %s980_s29  ;;  %s985_s20 = sshll.u32 %s1148_s11, 4  ;;  %s986_s20 = int_to_ptr.vmem [resolvable:$false] %s985_s20 }
  0x5c   : > { %s987_s18 = scalar_lea.vmem %s986_s20, 8192  ;;  %p988_p10 = scmp.lt.s32.totalorder %s1386_s26, %s986_s20 }
  0x5d   : > { %p983_p9 = pnand %p981_p6, %p967_p0  ;;  %p989_p7 = scmp.lt.s32.totalorder %s987_s18, %s980_s29 }
  0x5f   : > { %p984_p8 = pneg %p983_p9  ;;  %p990_p1 = por %p989_p7, %p988_p10 }
  0x61   : > { %p991_p3 = pnand %p990_p1, %p984_p8 }
  0x63   : > { %994 = shalt.err (!%p991_p3)
}
  0x64   : > { %s1149_s24 = smov 256   ;;  %s1150_s0 = smov 128  }
  0x65   : > { %s1151_s15 = smov 8   ;;  %211 = sbr.rel (%p1375_p4) target bundleno = 446 (0x1be), region = 32 }
  0x66   : > { %764 = dma.hbm_to_vmem [thread:$0]  (!%p1340_p11), %s1384_s14, 4096, %s1386_s26, %s1388_s7, %s1149_s24, %s1150_s0, %s1151_s15  }
  0x67   : > { %s213_s10 = sand.u32 (!%p1375_p4), 1, %s1121_s19   ;;  %p1603_p0 = scmp.ne.s32.totalorder (!%p1375_p4), %s1589_s8, 0 }
  0x68   : > { %s1419_s5 = sshll.u32 (!%p1375_p4), %s213_s10, 2  ;;  %s214_s4 = scalar_lea.sflag (!%p1375_p4), [#allocation4], %s213_s10 }
  0x69   : > { %s217_s29 = scalar_lea.vmem (!%p1375_p4), [#allocation3], %s1419_s5 }
  0x6c   : > { %1080 = dma.done.wait (%p1603_p0), %s214_s4, 64  }
  0x6d   : > { %1082 = vsyncadd (%p1603_p0), %s214_s4, 4294967232  ;;  %s222_s28 = sand.u32 1, %s1109_s16   ;;  %p1604_p11 = scmp.ne.s32.totalorder %s1592_s27, 0 }
  0x6e   : > { %s704_s14 = sshll.u32 %s222_s28, 8  ;;  %s223_s26 = scalar_lea.sflag [#allocation7], %s222_s28 }
  0x6f   : > { %s1427_s30 = scalar_lea.vmem [#allocation6], %s704_s14 }
  0x70   : > { %1084 = dma.done.wait (%p1604_p11), %s223_s26, 4096  }
  0x71   : > { %1086 = vsyncadd (%p1604_p11), %s223_s26, 4294963200  ;;  %s255_s7 = sand.u32 1, %s1097_s13   ;;  %s706_s11 = sshll.u32 %s1133_s22, 1 }
  0x72   : > { %s1437_s8 = sshll.u32 %s255_s7, 2  ;;  %p262_p4 = scmp.lt.s32.totalorder %s706_s11, 3 }
  0x73   : > { %s257_s0 = scalar_lea.vmem [#allocation8], %s1437_s8  ;;  %p707_p5 = scmp.ne.s32.totalorder %s1129_s21, 0 }
  0x74   : > { %s1633_s11 = smov (!%p262_p4, %s706_s11), 3  ;;  %v1152_v0 = vmov (!%p707_p5), 0.0  }
  0x75   : > { %s264_s24 = scalar_lea.vmem %s1570_s2, %s1633_s11  ;;  %270 = sbr.rel (%p707_p5) target bundleno = 124 (0x7c), region = 44  ;;  %271 = vst [vmem:[#allocation2] sm:$0xff] (!%p707_p5), %v1152_v0 }
  0x7c PF: > { %v887_v1 = vld [vmem:[%s1427_s30 + $0x4] ss:$8 sps:$4 sm:$0xff]   ;;  %v889_v2 = vld [vmem:[%s1427_s30] ss:$8 sps:$4 sm:$0xff]   ;;  %v890_v3 = vld [vmem:[%s1427_s30 + $0x14] ss:$8 sps:$4 sm:$0xff]  }
  0x7d   : > { %477 = vmatprep.subr.bf16.mxu0 %v887_v1  ;;  %v892_v4 = vld [vmem:[%s1427_s30 + $0x10] ss:$8 sps:$4 sm:$0xff]   ;;  %v893_v5 = vld [vmem:[%s1427_s30 + $0x24] ss:$8 sps:$4 sm:$0xff]   ;;  %v895_v6 = vld [vmem:[%s1427_s30 + $0x20] ss:$8 sps:$4 sm:$0xff]  }
  0x7e   : > { %478 = vmatpush1.bf16.msra.mxu0 %v889_v2  ;;  %v896_v7 = vld [vmem:[%s1427_s30 + $0x34] ss:$8 sps:$4 sm:$0xff]   ;;  %v898_v8 = vld [vmem:[%s1427_s30 + $0x30] ss:$8 sps:$4 sm:$0xff]   ;;  %v899_v9 = vld [vmem:[%s1427_s30 + $0x44] ss:$8 sps:$4 sm:$0xff]  }
  0x7f   : > { %479 = vmatprep.subr.bf16.mxu0 %v890_v3  ;;  %v901_v10 = vld [vmem:[%s1427_s30 + $0x40] ss:$8 sps:$4 sm:$0xff]   ;;  %v902_v11 = vld [vmem:[%s1427_s30 + $0x54] ss:$8 sps:$4 sm:$0xff]   ;;  %v904_v12 = vld [vmem:[%s1427_s30 + $0x50] ss:$8 sps:$4 sm:$0xff]  }
  0x80   : > { %v905_v13 = vld [vmem:[%s1427_s30 + $0x64] ss:$8 sps:$4 sm:$0xff]   ;;  %v708_v14 = vld.sshfl [vmem:[%s217_s29] sm:$0x33 pattern:$0x76325410] }
  0x81   : > { %v314_v15 = vcombine.high %v708_v14, %v708_v14  ;;  %v907_v16 = vld [vmem:[%s1427_s30 + $0x60] ss:$8 sps:$4 sm:$0xff]   ;;  %v908_v17 = vld [vmem:[%s1427_s30 + $0x74] ss:$8 sps:$4 sm:$0xff]   ;;  %v910_v18 = vld [vmem:[%s1427_s30 + $0x70] ss:$8 sps:$4 sm:$0xff]  }
  0x82   : > { %480 = vmatpush1.bf16.msra.mxu0 %v892_v4  ;;  %v911_v19 = vld [vmem:[%s1427_s30 + $0x84] ss:$8 sps:$4 sm:$0xff]   ;;  %v913_v20 = vld [vmem:[%s1427_s30 + $0x80] ss:$8 sps:$4 sm:$0xff]   ;;  %v914_v21 = vld [vmem:[%s1427_s30 + $0x94] ss:$8 sps:$4 sm:$0xff]  }
  0x83   : > { %481 = vmatprep.subr.bf16.mxu0 %v893_v5  ;;  %509 = vmatprep.mubr.bf16.mxu0 %v314_v15  ;;  %v916_v22 = vld [vmem:[%s1427_s30 + $0x90] ss:$8 sps:$4 sm:$0xff]   ;;  %v917_v23 = vld [vmem:[%s1427_s30 + $0xa4] ss:$8 sps:$4 sm:$0xff]   ;;  %v919_v24 = vld [vmem:[%s1427_s30 + $0xa0] ss:$8 sps:$4 sm:$0xff]  }
  0x84   : > { %v920_v25 = vld [vmem:[%s1427_s30 + $0xb4] ss:$8 sps:$4 sm:$0xff]   ;;  %v922_v26 = vld [vmem:[%s1427_s30 + $0xb0] ss:$8 sps:$4 sm:$0xff]   ;;  %v923_v27 = vld [vmem:[%s1427_s30 + $0xc4] ss:$8 sps:$4 sm:$0xff]  }
  0x85   : > { %v925_v28 = vld [vmem:[%s1427_s30 + $0xc0] ss:$8 sps:$4 sm:$0xff]   ;;  %v926_v29 = vld [vmem:[%s1427_s30 + $0xd4] ss:$8 sps:$4 sm:$0xff]   ;;  %v928_v30 = vld [vmem:[%s1427_s30 + $0xd0] ss:$8 sps:$4 sm:$0xff]  }
  0x86   : > { %482 = vmatpush1.bf16.msra.mxu0 %v895_v6  ;;  %v929_v31 = vld [vmem:[%s1427_s30 + $0xe4] ss:$8 sps:$4 sm:$0xff]   ;;  %v931_v32 = vld [vmem:[%s1427_s30 + $0xe0] ss:$8 sps:$4 sm:$0xff]   ;;  %v932_v33 = vld [vmem:[%s1427_s30 + $0xf4] ss:$8 sps:$4 sm:$0xff]  }
  0x87   : > { %483 = vmatprep.subr.bf16.mxu0 %v896_v7  ;;  %v934_v34 = vld [vmem:[%s1427_s30 + $0xf0] ss:$8 sps:$4 sm:$0xff]   ;;  %p741_p13 = scmp.ne.s32.totalorder %s1129_s21, 2 }
  0x88   : > { %v272_v36 = vld [vmem:[#allocation2] sm:$0xff]  ;;  %v531_v42 = vlaneseq (!%p741_p13) }
  0x89   : > { %v529_v44 = vld [vmem:[%s264_s24] sm:$0x3] (!%p741_p13) }
  0x8a   : > { %484 = vmatpush1.bf16.msra.mxu0 %v898_v8  ;;  %v532_v43 = vshrl.u32 (!%p741_p13), %v531_v42, 7 }
  0x8b   : > { %485 = vmatprep.subr.bf16.mxu0 %v899_v9 }
  0x8c   : > { %v533_v45 = vsub.s32 (!%p741_p13), 0, %v532_v43  ;;  %v537_v46 = vsub.s32 (!%p741_p13), 1, %v532_v43 }
  0x8e   : > { %486 = vmatpush1.bf16.msra.mxu0 %v901_v10  ;;  %v534_v47 = vrot.slane (!%p741_p13), %v529_v44, %v533_v45  ;;  %v538_v48 = vrot.slane (!%p741_p13), %v529_v44, %v537_v46 }
  0x8f   : > { %487 = vmatprep.subr.bf16.mxu0 %v902_v11 }
  0x90   : > { %v539_v50 = vcombine.low (!%p741_p13), %v534_v47, %v538_v48 }
  0x92   : > { %488 = vmatpush1.bf16.msra.mxu0 %v904_v12 }
  0x93   : > { %489 = vmatprep.subr.bf16.mxu0 %v905_v13 }
  0x96   : > { %490 = vmatpush1.bf16.msra.mxu0 %v907_v16 }
  0x97   : > { %491 = vmatprep.subr.bf16.mxu0 %v908_v17 }
  0x9a   : > { %492 = vmatpush1.bf16.msra.mxu0 %v910_v18 }
  0x9b   : > { %493 = vmatprep.subr.bf16.mxu0 %v911_v19 }
  0x9e   : > { %494 = vmatpush1.bf16.msra.mxu0 %v913_v20 }
  0x9f   : > { %495 = vmatprep.subr.bf16.mxu0 %v914_v21 }
  0xa2   : > { %496 = vmatpush1.bf16.msra.mxu0 %v916_v22 }
  0xa3   : > { %497 = vmatprep.subr.bf16.mxu0 %v917_v23 }
  0xa6   : > { %498 = vmatpush1.bf16.msra.mxu0 %v919_v24 }
  0xa7   : > { %499 = vmatprep.subr.bf16.mxu0 %v920_v25 }
  0xaa   : > { %500 = vmatpush1.bf16.msra.mxu0 %v922_v26 }
  0xab   : > { %501 = vmatprep.subr.bf16.mxu0 %v923_v27 }
  0xae   : > { %502 = vmatpush1.bf16.msra.mxu0 %v925_v28 }
  0xaf   : > { %503 = vmatprep.subr.bf16.mxu0 %v926_v29 }
  0xb2   : > { %504 = vmatpush1.bf16.msra.mxu0 %v928_v30 }
  0xb3   : > { %505 = vmatprep.subr.bf16.mxu0 %v929_v31 }
  0xb6   : > { %506 = vmatpush1.bf16.msra.mxu0 %v931_v32 }
  0xb7   : > { %507 = vmatprep.subr.bf16.mxu0 %v932_v33 }
  0xba   : > { %508 = vmatpush1.bf16.msra.mxu0 %v934_v34 }
  0xbd   : > { %510 = vmatmul.mubr.bf16.vlgmr.msra.gmra.mrb[0].mxu0 %v708_v14 }
 0x190   : > { %v511_v35 = vpop.f32.mrb[0].mxu0  ;;  %527 = sbr.rel (%p741_p13) target bundleno = 421 (0x1a5), region = 48 }
 0x191   : > { %v513_v37 = vpop.f32.mrb[1].mxu0 }
 0x192   : > { %v520_v38 = vcombine.low %v511_v35, %v513_v37  ;;  %v515_v39 = vpop.f32.mrb[2].mxu0 }
 0x193   : > { %v516_v40 = vpop.f32.mrb[3].mxu0 }
 0x194   : > { %v522_v41 = vadd.f32 %v520_v38, %v272_v36 }
 0x196   : > { %523 = vst [vmem:[#allocation2] sm:$0xff] %v522_v41 }
 0x19d   : > { %v528_v49 = vld [vmem:[#allocation2] sm:$0xff] }
 0x19e   : > { %v541_v51 = vadd.f32 %v539_v50, %v528_v49 }
 0x1a0   : > { %v543_v52 = vcombine.high %v541_v51, %v541_v51 }
 0x1a2   : > { %v742_v53 = vpack.c.bf16 %v543_v52, %v541_v51 }
 0x1a4   : > { %743 = vst.sshfl [vmem:[%s257_s0] sm:$0x33 pattern:$0x76325410] %v742_v53 }
 0x1a5 PF: > { %s751_s21 = sshll.u32 %s1133_s22, 6  ;;  %s574_s29 = sshll.u32 %s257_s0, 4  ;;  %s575_s29 = int_to_ptr.vmem [resolvable:$true] %s574_s29 }
 0x1a6   : > { %s1493_s4 = scalar_lea.hbm %s1571_s3, %s751_s21  ;;  %s560_s28 = scalar_lea.sflag [#allocation5], %s255_s7 }
 0x1a7   : > { %s995_s14 = scalar_lea.vmem %s575_s29, 64  ;;  %p1605_p12 = scmp.ne.s32.totalorder %s1595_s9, 0 }
 0x1a8   : > { %p996_p2 = scmp.ne.s32.totalorder %s575_s29, %s995_s14  ;;  %s1153_s26 = smov [#allocation8]  }
 0x1a9   : > { %s999_s30 = sshll.u32 %s1153_s26, 4  ;;  %s1000_s30 = int_to_ptr.vmem [resolvable:$false] %s999_s30 }
 0x1aa   : > { %p997_p6 = pnand %p996_p2, %p1605_p12  ;;  %s1001_s11 = scalar_lea.vmem %s1000_s30, 128 }
 0x1ab   : > { %p1002_p8 = scmp.lt.s32.totalorder %s575_s29, %s1000_s30  ;;  %p1003_p10 = scmp.lt.s32.totalorder %s1001_s11, %s995_s14 }
 0x1ac   : > { %p998_p9 = pneg %p997_p6 }
 0x1ad   : > { %p1004_p7 = por %p1003_p10, %p1002_p8 }
 0x1af   : > { %p1005_p1 = pnand %p1004_p7, %p998_p9 }
 0x1b1   : > { %1008 = shalt.err (!%p1005_p1)
}
 0x1b2   : > { %s1009_s22 = scalar_lea.hbm %s1493_s4, 64  ;;  %s1013_s20 = scalar_lea.hbm %s1571_s3, 128 }
 0x1b3   : > { %p1010_p3 = scmp.ne.s32.totalorder %s1493_s4, %s1009_s22  ;;  %p1014_p4 = scmp.lt.u32.totalorder %s1493_s4, %s1571_s3 }
 0x1b4   : > { %p1015_p5 = scmp.lt.u32.totalorder %s1013_s20, %s1009_s22  ;;  %p1017_p2 = scmp.lt.u32.totalorder %s1009_s22, %s1493_s4 }
 0x1b5   : > { %p1011_p0 = pnand %p1010_p3, %p1605_p12 }
 0x1b6   : > { %p1016_p13 = por %p1015_p5, %p1014_p4 }
 0x1b7   : > { %p1012_p11 = pneg %p1011_p0 }
 0x1b8   : > { %p1018_p6 = por %p1017_p2, %p1016_p13 }
 0x1ba   : > { %p1019_p9 = pnand %p1018_p6, %p1012_p11 }
 0x1bc   : > { %1022 = shalt.err (!%p1019_p9)
}
 0x1bd   : > { %756 = dma.vmem_to_hbm [thread:$0]  (%p1605_p12), %s575_s29, 64, %s1493_s4, %s560_s28  }
 0x1be PF: > { %p770_p8 = scmp.ge.s32.totalorder %s1145_s25, 2  ;;  %s586_s0 = sand.u32 1, %s1093_s12  }
 0x1bf   : > { %p1606_p10 = scmp.ne.s32.totalorder %s1596_s6, 0  ;;  %s587_s27 = scalar_lea.sflag [#allocation5], %s586_s0 }
 0x1c1   : > { %p766_p7 = pnand %p770_p8, %p1606_p10 }
 0x1c3   : > { %1088 = dma.done.wait (!%p766_p7), %s587_s27, 64  }
 0x1c4   : > { %1090 = vsyncadd (!%p766_p7), %s587_s27, 4294967232  ;;  %s22_s25 = sadd.s32 1, %s1145_s25   ;;  %s1608_s9 = sld [smem:[#allocation12_spill]] }
 0x1c5   : > { %p1521_p1 = scmp.ge.s32.totalorder %s22_s25, 8   ;;  %s1609_s14 = sld [smem:[#allocation19_spill]] }
 0x1c6   : > { %s1610_s21 = sld [smem:[#allocation18_spill]]  ;;  %s1611_s10 = sld [smem:[#allocation13_spill]] }
 0x1c7   : > { %s1612_s20 = sld [smem:[#allocation17_spill]]  ;;  %s1613_s22 = sld [smem:[#allocation14_spill]] }
 0x1c8   : > { %s1614_s6 = sld [smem:[#allocation15_spill]]  ;;  %s1615_s24 = sld [smem:[#allocation16_spill]] }
 0x1c9   : > { %s1617_s12 = smov %s1097_s13  ;;  %s1619_s15 = smov %s1109_s16 }
 0x1ca   : > { %s1618_s13 = smov %s1608_s9  ;;  %s1620_s16 = smov %s1113_s17 }
 0x1cb   : > { %s1622_s18 = smov %s1121_s19  ;;  %21 = sbr.rel (!%p1521_p1) target bundleno = 14 (0xe), region = 101 }
 0x1cc   : > { %s1621_s17 = smov %s1610_s21  ;;  %s1623_s19 = smov %s1611_s10 }
 0x1cd   : > { %s1624_s21 = smov %s1137_s23 }
 0x1ce   : > { %s1625_s23 = smov %s1614_s6 }
 0x1d2   :  { %592 = vsyncpa [#allocation4], 1 }
 0x1d3   :  { %594 = vsyncpa [#allocation4 + $0x1], 1 }
 0x1d4   :  { %595 = vsyncpa [#allocation7], 1 }
 0x1d5   :  { %597 = vsyncpa [#allocation7 + $0x1], 1 }
 0x1d6   :  { %598 = vsyncpa [#allocation5], 1 }
 0x1d7   :  { %600 = vsyncpa [#allocation5 + $0x1], 1 }

</bundles_post_ra>
